<compile_context>
chip_gen: v6e
topology: v6e:2x2x1
jax: 0.10.0
libtpu: 0.0.40
codegen_flags: <defaults>
</compile_context>

<pallas_src>
import math

import jax
import jax.numpy as jnp
from jax import lax
from jax.experimental import pallas as pl
from jax.experimental.pallas import tpu as pltpu

NUM_HEADS = 2
D_MODEL = 4
D_HEAD = D_MODEL // NUM_HEADS


def _mha_kernel(q_ref, k_ref, v_ref,
                wq_ref, bq_ref, wk_ref, bk_ref, wv_ref, bv_ref,
                wo_ref, bo_ref,
                proj_ref, attn_ref,
                head_buf):
    """One grid step == one batch element (an (S, D) row tile).

    head_buf: (S, H*d) VMEM scratch holding concat(heads) so the output
    projection is a single fused matmul.
    """
    scale = 1.0 / math.sqrt(D_HEAD)

    # Head-fused input projections: one (S, D) @ (D, H*d) matmul per input,
    # one broadcast bias add each.
    Q = jnp.dot(q_ref[...], wq_ref[...],
                preferred_element_type=jnp.float32) + bq_ref[...]
    K = jnp.dot(k_ref[...], wk_ref[...],
                preferred_element_type=jnp.float32) + bk_ref[...]
    V = jnp.dot(v_ref[...], wv_ref[...],
                preferred_element_type=jnp.float32) + bv_ref[...]

    attn_last = None
    for h in range(NUM_HEADS):             # static, tiny (H == 2)
        cols = slice(h * D_HEAD, (h + 1) * D_HEAD)
        # Q K^T without materializing a transpose: contract the last dim of
        # both operands ('qd,kd->qk'), so no XLU vxpose per head/batch.
        scores = lax.dot_general(
            Q[:, cols], K[:, cols],
            dimension_numbers=(((1,), (1,)), ((), ())),
            preferred_element_type=jnp.float32) * scale
        scores = scores - jnp.max(scores, axis=-1, keepdims=True)
        e = jnp.exp(scores)
        # Exact division keeps f32 parity with torch.softmax.
        attn = e / jnp.sum(e, axis=-1, keepdims=True)
        # Stage this head's output into its lane columns of the scratch.
        head_buf[:, cols] = jnp.dot(attn, V[:, cols],
                                    preferred_element_type=jnp.float32)
        attn_last = attn                   # PyTorch returns the LAST head's weights

    # Fused output projection: concat(heads) @ Wo + bo in one MXU matmul.
    # TODO(synk): nn.Dropout(0.2) is stochastic in training mode; treated as
    # eval-mode identity here.
    proj_ref[...] = (jnp.dot(head_buf[...], wo_ref[...],
                             preferred_element_type=jnp.float32)
                     + bo_ref[...]).astype(proj_ref.dtype)
    attn_ref[...] = attn_last.astype(attn_ref.dtype)


def _fuse_heads(w, b):
    """Stack per-head weights (H, D, d)->(D, H*d) and biases (H, 1, d)->(1, H*d)."""
    h, dm, dh = w.shape
    return (jnp.transpose(w, (1, 0, 2)).reshape(dm, h * dh),
            b.reshape(1, h * dh))


def mha_forward(q, k, v, params):
    """q, k, v: [B, S, D] float32. Returns (projection [B,S,D], last-head attn [B,S,S])."""
    B, S, D = q.shape
    assert D == D_MODEL and k.shape == q.shape and v.shape == q.shape
    assert S % 8 == 0, "row tile (S) must be a sublane multiple"

    wq, bq, wk, bk, wv, bv, wo, bo = params
    wq_f, bq_f = _fuse_heads(wq, bq)
    wk_f, bk_f = _fuse_heads(wk, bk)
    wv_f, bv_f = _fuse_heads(wv, bv)

    # Row-major slabs: each grid step owns a contiguous (S, D) row tile, so
    # BlockSpec double-buffering overlaps the next batch's DMA with compute.
    q2 = q.reshape(B * S, D)
    k2 = k.reshape(B * S, D)
    v2 = v.reshape(B * S, D)

    row_spec = pl.BlockSpec((S, D), lambda b: (b, 0))
    attn_spec = pl.BlockSpec((S, S), lambda b: (b, 0))

    def bcast_spec(arr):
        nd = arr.ndim
        return pl.BlockSpec(arr.shape, lambda b, _nd=nd: (0,) * _nd)

    weights = (wq_f, bq_f, wk_f, bk_f, wv_f, bv_f, wo, bo)

    proj_flat, attn_flat = pl.pallas_call(
        _mha_kernel,
        out_shape=(
            jax.ShapeDtypeStruct((B * S, D), jnp.float32),
            jax.ShapeDtypeStruct((B * S, S), jnp.float32),
        ),
        grid_spec=pltpu.PrefetchScalarGridSpec(
            num_scalar_prefetch=0,
            grid=(B,),                           # batch on the grid -> pipelined
            in_specs=[row_spec, row_spec, row_spec]
                     + [bcast_spec(w) for w in weights],
            out_specs=(row_spec, attn_spec),
            scratch_shapes=[pltpu.VMEM((S, NUM_HEADS * D_HEAD), jnp.float32)],
        ),
        compiler_params=pltpu.CompilerParams(
            dimension_semantics=("parallel",),    # megacore sharding on v7x
            vmem_limit_bytes=32 * 1024 * 1024,    # explicit budget; tiles are tiny
        ),
    )(q2, k2, v2, *weights)

    return proj_flat.reshape(B, S, D), attn_flat.reshape(B, S, S)


def init_params(key):
    """Deterministic parameter init matching the shapes implied by Mha.__init__."""
    keys = jax.random.split(key, 8)
    wq = jax.random.normal(keys[0], (NUM_HEADS, D_MODEL, D_HEAD), jnp.float32) * 0.5
    bq = jax.random.normal(keys[1], (NUM_HEADS, 1, D_HEAD), jnp.float32) * 0.1
    wk = jax.random.normal(keys[2], (NUM_HEADS, D_MODEL, D_HEAD), jnp.float32) * 0.5
    bk = jax.random.normal(keys[3], (NUM_HEADS, 1, D_HEAD), jnp.float32) * 0.1
    wv = jax.random.normal(keys[4], (NUM_HEADS, D_MODEL, D_HEAD), jnp.float32) * 0.5
    bv = jax.random.normal(keys[5], (NUM_HEADS, 1, D_HEAD), jnp.float32) * 0.1
    wo = jax.random.normal(keys[6], (D_MODEL, D_MODEL), jnp.float32) * 0.5
    bo = jax.random.normal(keys[7], (1, D_MODEL), jnp.float32) * 0.1
    return wq, bq, wk, bk, wv, bv, wo, bo


def mha_reference(q, k, v, params):
    """Plain-JAX reference mirroring the PyTorch forward (dropout = identity)."""
    wq, bq, wk, bk, wv, bv, wo, bo = params
    outs, attn_last = [], None
    for h in range(NUM_HEADS):
        Qh = q @ wq[h] + bq[h]
        Kh = k @ wk[h] + bk[h]
        Vh = v @ wv[h] + bv[h]
        scores = jnp.einsum("bqd,bkd->bqk", Qh, Kh) / math.sqrt(D_HEAD)
        attn = jax.nn.softmax(scores, axis=-1)
        outs.append(jnp.einsum("bqk,bkd->bqd", attn, Vh))
        attn_last = attn
    concat = jnp.concatenate(outs, axis=-1)
    return concat @ wo + bo, attn_last


if __name__ == "__main__":
    B, S = 2, 8
    key = jax.random.PRNGKey(0)
    kq, kk, kv, kp = jax.random.split(key, 4)
    q = jax.random.normal(kq, (B, S, D_MODEL), jnp.float32)
    k = jax.random.normal(kk, (B, S, D_MODEL), jnp.float32)
    v = jax.random.normal(kv, (B, S, D_MODEL), jnp.float32)
    params = init_params(kp)

    proj, attn = mha_forward(q, k, v, params)
    proj = jax.block_until_ready(proj)
    attn = jax.block_until_ready(attn)

    proj_ref, attn_ref = mha_reference(q, k, v, params)
    assert jnp.allclose(proj, proj_ref, atol=1e-4, rtol=1e-4), "projection mismatch"
    assert jnp.allclose(attn, attn_ref, atol=1e-4, rtol=1e-4), "attention mismatch"

    print("KERNEL_OK")
</pallas_src>

<mosaic_0001>
module attributes {stable_mosaic.version = 11 : i64} {
  func.func @_mha_kernel(%arg0: i32, %arg1: memref<8x4xf32, #tpu.memory_space<vmem>>, %arg2: memref<8x4xf32, #tpu.memory_space<vmem>>, %arg3: memref<8x4xf32, #tpu.memory_space<vmem>>, %arg4: memref<4x4xf32, #tpu.memory_space<vmem>>, %arg5: memref<1x4xf32, #tpu.memory_space<vmem>>, %arg6: memref<4x4xf32, #tpu.memory_space<vmem>>, %arg7: memref<1x4xf32, #tpu.memory_space<vmem>>, %arg8: memref<4x4xf32, #tpu.memory_space<vmem>>, %arg9: memref<1x4xf32, #tpu.memory_space<vmem>>, %arg10: memref<4x4xf32, #tpu.memory_space<vmem>>, %arg11: memref<1x4xf32, #tpu.memory_space<vmem>>, %arg12: memref<8x4xf32, #tpu.memory_space<vmem>>, %arg13: memref<8x8xf32, #tpu.memory_space<vmem>>, %arg14: memref<8x4xf32, #tpu.memory_space<vmem>>) attributes {dimension_semantics = [#tpu.dimension_semantics<parallel>], iteration_bounds = array<i64: 2>, scalar_prefetch = 0 : i64, scratch_operands = 1 : i64, tpu.core_type = #tpu.core_type<tc>, window_params = [{transform_indices = @transform_0, window_bounds = array<i64: 8, 4>}, {transform_indices = @transform_1, window_bounds = array<i64: 8, 4>}, {transform_indices = @transform_2, window_bounds = array<i64: 8, 4>}, {pipeline_mode = #tpu.pipeline_mode<synchronous>, transform_indices = @transform_3, window_bounds = array<i64: 4, 4>}, {pipeline_mode = #tpu.pipeline_mode<synchronous>, transform_indices = @transform_4, window_bounds = array<i64: 1, 4>}, {pipeline_mode = #tpu.pipeline_mode<synchronous>, transform_indices = @transform_5, window_bounds = array<i64: 4, 4>}, {pipeline_mode = #tpu.pipeline_mode<synchronous>, transform_indices = @transform_6, window_bounds = array<i64: 1, 4>}, {pipeline_mode = #tpu.pipeline_mode<synchronous>, transform_indices = @transform_7, window_bounds = array<i64: 4, 4>}, {pipeline_mode = #tpu.pipeline_mode<synchronous>, transform_indices = @transform_8, window_bounds = array<i64: 1, 4>}, {pipeline_mode = #tpu.pipeline_mode<synchronous>, transform_indices = @transform_9, window_bounds = array<i64: 4, 4>}, {pipeline_mode = #tpu.pipeline_mode<synchronous>, transform_indices = @transform_10, window_bounds = array<i64: 1, 4>}, {transform_indices = @transform_11, window_bounds = array<i64: 8, 4>}, {transform_indices = @transform_12, window_bounds = array<i64: 8, 8>}]} {
    %c0 = arith.constant 0 : index
    %c0_0 = arith.constant 0 : index
    %0 = vector.load %arg1[%c0, %c0_0] : memref<8x4xf32, #tpu.memory_space<vmem>>, vector<8x4xf32>
    %c0_1 = arith.constant 0 : index
    %c0_2 = arith.constant 0 : index
    %1 = vector.load %arg4[%c0_1, %c0_2] : memref<4x4xf32, #tpu.memory_space<vmem>>, vector<4x4xf32>
    %cst = arith.constant dense<0.000000e+00> : vector<8x4xf32>
    %2 = tpu.matmul %0, %1, %cst {dimension_numbers = #tpu.dot_dimension_numbers<[1], [0], [0], [1], [0, 0, 1, 1], [], []>} : vector<8x4xf32>, vector<4x4xf32>, vector<8x4xf32> -> vector<8x4xf32>
    %c0_3 = arith.constant 0 : index
    %c0_4 = arith.constant 0 : index
    %3 = vector.load %arg5[%c0_3, %c0_4] : memref<1x4xf32, #tpu.memory_space<vmem>>, vector<1x4xf32>
    %4 = vector.broadcast %3 : vector<1x4xf32> to vector<8x4xf32>
    %5 = arith.addf %2, %4 : vector<8x4xf32>
    %c0_5 = arith.constant 0 : index
    %c0_6 = arith.constant 0 : index
    %6 = vector.load %arg2[%c0_5, %c0_6] : memref<8x4xf32, #tpu.memory_space<vmem>>, vector<8x4xf32>
    %c0_7 = arith.constant 0 : index
    %c0_8 = arith.constant 0 : index
    %7 = vector.load %arg6[%c0_7, %c0_8] : memref<4x4xf32, #tpu.memory_space<vmem>>, vector<4x4xf32>
    %cst_9 = arith.constant dense<0.000000e+00> : vector<8x4xf32>
    %8 = tpu.matmul %6, %7, %cst_9 {dimension_numbers = #tpu.dot_dimension_numbers<[1], [0], [0], [1], [0, 0, 1, 1], [], []>} : vector<8x4xf32>, vector<4x4xf32>, vector<8x4xf32> -> vector<8x4xf32>
    %c0_10 = arith.constant 0 : index
    %c0_11 = arith.constant 0 : index
    %9 = vector.load %arg7[%c0_10, %c0_11] : memref<1x4xf32, #tpu.memory_space<vmem>>, vector<1x4xf32>
    %10 = vector.broadcast %9 : vector<1x4xf32> to vector<8x4xf32>
    %11 = arith.addf %8, %10 : vector<8x4xf32>
    %c0_12 = arith.constant 0 : index
    %c0_13 = arith.constant 0 : index
    %12 = vector.load %arg3[%c0_12, %c0_13] : memref<8x4xf32, #tpu.memory_space<vmem>>, vector<8x4xf32>
    %c0_14 = arith.constant 0 : index
    %c0_15 = arith.constant 0 : index
    %13 = vector.load %arg8[%c0_14, %c0_15] : memref<4x4xf32, #tpu.memory_space<vmem>>, vector<4x4xf32>
    %cst_16 = arith.constant dense<0.000000e+00> : vector<8x4xf32>
    %14 = tpu.matmul %12, %13, %cst_16 {dimension_numbers = #tpu.dot_dimension_numbers<[1], [0], [0], [1], [0, 0, 1, 1], [], []>} : vector<8x4xf32>, vector<4x4xf32>, vector<8x4xf32> -> vector<8x4xf32>
    %c0_17 = arith.constant 0 : index
    %c0_18 = arith.constant 0 : index
    %15 = vector.load %arg9[%c0_17, %c0_18] : memref<1x4xf32, #tpu.memory_space<vmem>>, vector<1x4xf32>
    %16 = vector.broadcast %15 : vector<1x4xf32> to vector<8x4xf32>
    %17 = arith.addf %14, %16 : vector<8x4xf32>
    %18 = vector.extract_strided_slice %5 {offsets = [0, 0], sizes = [8, 2], strides = [1, 1]} : vector<8x4xf32> to vector<8x2xf32>
    %19 = vector.extract_strided_slice %11 {offsets = [0, 0], sizes = [8, 2], strides = [1, 1]} : vector<8x4xf32> to vector<8x2xf32>
    %cst_19 = arith.constant dense<0.000000e+00> : vector<8x8xf32>
    %20 = tpu.matmul %18, %19, %cst_19 {dimension_numbers = #tpu.dot_dimension_numbers<[1], [1], [0], [0], [0, 0, 1, 0], [], []>} : vector<8x2xf32>, vector<8x2xf32>, vector<8x8xf32> -> vector<8x8xf32>
    %cst_20 = arith.constant 0.707106769 : f32
    %21 = vector.broadcast %cst_20 : f32 to vector<8x8xf32>
    %22 = arith.mulf %20, %21 : vector<8x8xf32>
    %cst_21 = arith.constant dense<0xFF800000> : vector<8xf32>
    %23 = vector.multi_reduction <maximumf>, %22, %cst_21 [1] : vector<8x8xf32> to vector<8xf32>
    %24 = vector.shape_cast %23 : vector<8xf32> to vector<8x1xf32>
    %25 = vector.broadcast %24 : vector<8x1xf32> to vector<8x8xf32>
    %26 = arith.subf %22, %25 : vector<8x8xf32>
    %27 = math.exp %26 : vector<8x8xf32>
    %cst_22 = arith.constant dense<0.000000e+00> : vector<8xf32>
    %28 = vector.multi_reduction <add>, %27, %cst_22 [1] : vector<8x8xf32> to vector<8xf32>
    %29 = vector.shape_cast %28 : vector<8xf32> to vector<8x1xf32>
    %30 = vector.broadcast %29 : vector<8x1xf32> to vector<8x8xf32>
    %31 = arith.divf %27, %30 : vector<8x8xf32>
    %32 = vector.extract_strided_slice %17 {offsets = [0, 0], sizes = [8, 2], strides = [1, 1]} : vector<8x4xf32> to vector<8x2xf32>
    %cst_23 = arith.constant dense<0.000000e+00> : vector<8x2xf32>
    %33 = tpu.matmul %31, %32, %cst_23 {dimension_numbers = #tpu.dot_dimension_numbers<[1], [0], [0], [1], [0, 0, 1, 1], [], []>} : vector<8x8xf32>, vector<8x2xf32>, vector<8x2xf32> -> vector<8x2xf32>
    %c0_24 = arith.constant 0 : index
    %c0_25 = arith.constant 0 : index
    %34 = vector.load %arg14[%c0_24, %c0_25] : memref<8x4xf32, #tpu.memory_space<vmem>>, vector<8x2xf32>
    tpu.vector_store %arg14[%c0_24, %c0_25], %33 {strides = array<i32>} : memref<8x4xf32, #tpu.memory_space<vmem>>, vector<8x2xf32>,
    %35 = vector.extract_strided_slice %5 {offsets = [0, 2], sizes = [8, 2], strides = [1, 1]} : vector<8x4xf32> to vector<8x2xf32>
    %36 = vector.extract_strided_slice %11 {offsets = [0, 2], sizes = [8, 2], strides = [1, 1]} : vector<8x4xf32> to vector<8x2xf32>
    %cst_26 = arith.constant dense<0.000000e+00> : vector<8x8xf32>
    %37 = tpu.matmul %35, %36, %cst_26 {dimension_numbers = #tpu.dot_dimension_numbers<[1], [1], [0], [0], [0, 0, 1, 0], [], []>} : vector<8x2xf32>, vector<8x2xf32>, vector<8x8xf32> -> vector<8x8xf32>
    %cst_27 = arith.constant 0.707106769 : f32
    %38 = vector.broadcast %cst_27 : f32 to vector<8x8xf32>
    %39 = arith.mulf %37, %38 : vector<8x8xf32>
    %cst_28 = arith.constant dense<0xFF800000> : vector<8xf32>
    %40 = vector.multi_reduction <maximumf>, %39, %cst_28 [1] : vector<8x8xf32> to vector<8xf32>
    %41 = vector.shape_cast %40 : vector<8xf32> to vector<8x1xf32>
    %42 = vector.broadcast %41 : vector<8x1xf32> to vector<8x8xf32>
    %43 = arith.subf %39, %42 : vector<8x8xf32>
    %44 = math.exp %43 : vector<8x8xf32>
    %cst_29 = arith.constant dense<0.000000e+00> : vector<8xf32>
    %45 = vector.multi_reduction <add>, %44, %cst_29 [1] : vector<8x8xf32> to vector<8xf32>
    %46 = vector.shape_cast %45 : vector<8xf32> to vector<8x1xf32>
    %47 = vector.broadcast %46 : vector<8x1xf32> to vector<8x8xf32>
    %48 = arith.divf %44, %47 : vector<8x8xf32>
    %49 = vector.extract_strided_slice %17 {offsets = [0, 2], sizes = [8, 2], strides = [1, 1]} : vector<8x4xf32> to vector<8x2xf32>
    %cst_30 = arith.constant dense<0.000000e+00> : vector<8x2xf32>
    %50 = tpu.matmul %48, %49, %cst_30 {dimension_numbers = #tpu.dot_dimension_numbers<[1], [0], [0], [1], [0, 0, 1, 1], [], []>} : vector<8x8xf32>, vector<8x2xf32>, vector<8x2xf32> -> vector<8x2xf32>
    %c0_31 = arith.constant 0 : index
    %c2 = arith.constant 2 : index
    %51 = vector.load %arg14[%c0_31, %c2] : memref<8x4xf32, #tpu.memory_space<vmem>>, vector<8x2xf32>
    tpu.vector_store %arg14[%c0_31, %c2], %50 {strides = array<i32>} : memref<8x4xf32, #tpu.memory_space<vmem>>, vector<8x2xf32>,
    %c0_32 = arith.constant 0 : index
    %c0_33 = arith.constant 0 : index
    %52 = vector.load %arg14[%c0_32, %c0_33] : memref<8x4xf32, #tpu.memory_space<vmem>>, vector<8x4xf32>
    %c0_34 = arith.constant 0 : index
    %c0_35 = arith.constant 0 : index
    %53 = vector.load %arg10[%c0_34, %c0_35] : memref<4x4xf32, #tpu.memory_space<vmem>>, vector<4x4xf32>
    %cst_36 = arith.constant dense<0.000000e+00> : vector<8x4xf32>
    %54 = tpu.matmul %52, %53, %cst_36 {dimension_numbers = #tpu.dot_dimension_numbers<[1], [0], [0], [1], [0, 0, 1, 1], [], []>} : vector<8x4xf32>, vector<4x4xf32>, vector<8x4xf32> -> vector<8x4xf32>
    %c0_37 = arith.constant 0 : index
    %c0_38 = arith.constant 0 : index
    %55 = vector.load %arg11[%c0_37, %c0_38] : memref<1x4xf32, #tpu.memory_space<vmem>>, vector<1x4xf32>
    %56 = vector.broadcast %55 : vector<1x4xf32> to vector<8x4xf32>
    %57 = arith.addf %54, %56 : vector<8x4xf32>
    %c0_39 = arith.constant 0 : index
    %c0_40 = arith.constant 0 : index
    %58 = vector.load %arg12[%c0_39, %c0_40] : memref<8x4xf32, #tpu.memory_space<vmem>>, vector<8x4xf32>
    tpu.vector_store %arg12[%c0_39, %c0_40], %57 {strides = array<i32>} : memref<8x4xf32, #tpu.memory_space<vmem>>, vector<8x4xf32>,
    %c0_41 = arith.constant 0 : index
    %c0_42 = arith.constant 0 : index
    %59 = vector.load %arg13[%c0_41, %c0_42] : memref<8x8xf32, #tpu.memory_space<vmem>>, vector<8x8xf32>
    tpu.vector_store %arg13[%c0_41, %c0_42], %48 {strides = array<i32>} : memref<8x8xf32, #tpu.memory_space<vmem>>, vector<8x8xf32>,
    return
  }
  func.func @transform_0(%arg0: i32) -> (i32, i32) {
    %c0_i32 = arith.constant 0 : i32
    %c0_i32_0 = arith.constant 0 : i32
    return %arg0, %c0_i32 : i32, i32
  }
  func.func @transform_1(%arg0: i32) -> (i32, i32) {
    %c0_i32 = arith.constant 0 : i32
    %c0_i32_0 = arith.constant 0 : i32
    return %arg0, %c0_i32 : i32, i32
  }
  func.func @transform_2(%arg0: i32) -> (i32, i32) {
    %c0_i32 = arith.constant 0 : i32
    %c0_i32_0 = arith.constant 0 : i32
    return %arg0, %c0_i32 : i32, i32
  }
  func.func @transform_3(%arg0: i32) -> (i32, i32) {
    %c0_i32 = arith.constant 0 : i32
    %c0_i32_0 = arith.constant 0 : i32
    %c0_i32_1 = arith.constant 0 : i32
    return %c0_i32, %c0_i32_0 : i32, i32
  }
  func.func @transform_4(%arg0: i32) -> (i32, i32) {
    %c0_i32 = arith.constant 0 : i32
    %c0_i32_0 = arith.constant 0 : i32
    %c0_i32_1 = arith.constant 0 : i32
    return %c0_i32, %c0_i32_0 : i32, i32
  }
  func.func @transform_5(%arg0: i32) -> (i32, i32) {
    %c0_i32 = arith.constant 0 : i32
    %c0_i32_0 = arith.constant 0 : i32
    %c0_i32_1 = arith.constant 0 : i32
    return %c0_i32, %c0_i32_0 : i32, i32
  }
  func.func @transform_6(%arg0: i32) -> (i32, i32) {
    %c0_i32 = arith.constant 0 : i32
    %c0_i32_0 = arith.constant 0 : i32
    %c0_i32_1 = arith.constant 0 : i32
    return %c0_i32, %c0_i32_0 : i32, i32
  }
  func.func @transform_7(%arg0: i32) -> (i32, i32) {
    %c0_i32 = arith.constant 0 : i32
    %c0_i32_0 = arith.constant 0 : i32
    %c0_i32_1 = arith.constant 0 : i32
    return %c0_i32, %c0_i32_0 : i32, i32
  }
  func.func @transform_8(%arg0: i32) -> (i32, i32) {
    %c0_i32 = arith.constant 0 : i32
    %c0_i32_0 = arith.constant 0 : i32
    %c0_i32_1 = arith.constant 0 : i32
    return %c0_i32, %c0_i32_0 : i32, i32
  }
  func.func @transform_9(%arg0: i32) -> (i32, i32) {
    %c0_i32 = arith.constant 0 : i32
    %c0_i32_0 = arith.constant 0 : i32
    %c0_i32_1 = arith.constant 0 : i32
    return %c0_i32, %c0_i32_0 : i32, i32
  }
  func.func @transform_10(%arg0: i32) -> (i32, i32) {
    %c0_i32 = arith.constant 0 : i32
    %c0_i32_0 = arith.constant 0 : i32
    %c0_i32_1 = arith.constant 0 : i32
    return %c0_i32, %c0_i32_0 : i32, i32
  }
  func.func @transform_11(%arg0: i32) -> (i32, i32) {
    %c0_i32 = arith.constant 0 : i32
    %c0_i32_0 = arith.constant 0 : i32
    return %arg0, %c0_i32 : i32, i32
  }
  func.func @transform_12(%arg0: i32) -> (i32, i32) {
    %c0_i32 = arith.constant 0 : i32
    %c0_i32_0 = arith.constant 0 : i32
    return %arg0, %c0_i32 : i32, i32
  }
}

</mosaic_0001>

<bundles_post_ra>
// kernel: tpu_custom_call.1
= control target key start
LH: loop header
LB: loop body
LE: loop exit
PB: predicated region body
PF: predicated region fallthrough
CT: control target
= control target key end

     0   :  { %s1426_s21 = smov 0   ;;  %s1531_s0 = inlined_call_operand.vmem [shape: f32[16,4], index: 0, kind: input, shape index: {}]   ;;  %s1532_s1 = inlined_call_operand.vmem [shape: f32[16,4], index: 1, kind: input, shape index: {}]   ;;  %s1533_s2 = inlined_call_operand.vmem [shape: f32[16,4], index: 2, kind: input, shape index: {}]   ;;  %s1534_s3 = inlined_call_operand.vmem [shape: f32[4,4], index: 3, kind: input, shape index: {}]   ;;  %s1535_s4 = inlined_call_operand.vmem [shape: f32[1,4], index: 4, kind: input, shape index: {}]   ;;  %s1536_s5 = inlined_call_operand.vmem [shape: f32[4,4], index: 5, kind: input, shape index: {}]   ;;  %s1537_s6 = inlined_call_operand.vmem [shape: f32[1,4], index: 6, kind: input, shape index: {}]   ;;  %s1538_s7 = inlined_call_operand.vmem [shape: f32[4,4], index: 7, kind: input, shape index: {}]   ;;  %s1539_s8 = inlined_call_operand.vmem [shape: f32[1,4], index: 8, kind: input, shape index: {}]   ;;  %s1540_s9 = inlined_call_operand.vmem [shape: f32[4,4], index: 9, kind: input, shape index: {}]   ;;  %s1541_s10 = inlined_call_operand.vmem [shape: f32[1,4], index: 10, kind: input, shape index: {}]   ;;  %s1542_s11 = inlined_call_operand.vmem [shape: f32[16,4], index: 11, kind: output, shape index: {0}]   ;;  %s1543_s12 = inlined_call_operand.vmem [shape: f32[16,8], index: 12, kind: output, shape index: {1}]  }
   0x1 LB: > { %s1243_s22 = sadd.s32 4294967295, %s1355_s21   ;;  %p1247_p0 = scmp.ge.s32.totalorder %s1355_s21, 1  ;;  %s1355_s21 = sphi %s1426_s21, %s23_s21  }
   0x2   : > { %p382_p1 = scmp.lt.s32.totalorder %s1355_s21, 3 }
   0x4   : > { %p383_p2 = pnand %p1247_p0, %p382_p1 }
   0x5   : > { %p434_p3 = scmp.lt.s32.totalorder (!%p383_p2), %s1243_s22, 1  ;;  %s1359_s20 = smov (!%p383_p2), 126  }
   0x6   : > { %386 = sbr.rel (%p383_p2) target bundleno = 1349 (0x545), region = 64  ;;  %s1360_s17 = smov (!%p383_p2), 2  }
   0xb   : > { %vm467_vm0 = vcmask 1043456   ;;  %v542_v0 = vld [vmem:[%s1536_s5] sm:$0xf]  ;;  %v1357_v1 = vmov 0.0   ;;  %vm1358_vm1 = vmmov 0   ;;  %s1545_s22 = smov (!%p434_p3, %s1243_s22), 1 }
   0xc   : > { %1294 = vmatprep.subr.mxu1 %v1357_v1  ;;  %1296 = vmatprep.mubr.msk.f32.mxu1 %vm1358_vm1, %v1357_v1  ;;  %v455_v2 = vld [vmem:[%s1534_s3] sm:$0xf]  ;;  %s1448_s27 = sshll.u32 %s1545_s22, 3  ;;  %vm463_vm2 = vcmask 31744   ;;  %vm711_vm3 = vcmask 15360   ;;  %vm789_vm4 = vcmask 64512  }
   0xd   : > { %1295 = vmatpush3.msk.msra.mxu1 %vm467_vm0, %v542_v0  ;;  %1289 = vmatprep.subr.mxu0 %v1357_v1  ;;  %s441_s30 = scalar_lea.vmem %s1532_s1, %s1448_s27  ;;  %s437_s15 = scalar_lea.vmem %s1531_s0, %s1448_s27  ;;  %v1256_v5 = vld [vmem:[%s1537_s6] ss:$0 sm:$0xff]  ;;  %vm1046_vm5 = vcmask 31760  }
   0xe   : > { %1290 = vmatpush3.msk.msra.mxu0 %vm467_vm0, %v455_v2  ;;  %1291 = vmatprep.mubr.msk.f32.mxu0 %vm1358_vm1, %v1357_v1  ;;  %v541_v3 = vld [vmem:[%s441_s30] sm:$0xff]  ;;  %s445_s26 = scalar_lea.vmem %s1533_s2, %s1448_s27  ;;  %s453_s14 = scalar_lea.vmem %s1543_s12, %s1448_s27 }
   0xf   : > { %1304 = vmatprep.subr.mxu1 %v1357_v1  ;;  %1299 = vmatprep.subr.mxu0 %v1357_v1  ;;  %v454_v4 = vld [vmem:[%s437_s15] sm:$0xff]  ;;  %s449_s23 = scalar_lea.vmem %s1542_s11, %s1448_s27 }
  0x10   : > { %1297 = vmatmul.mubr.msk.f32.vlgmr.msra.gmra.mxu1 %vm463_vm2, %v541_v3  ;;  %1292 = vmatmul.mubr.msk.f32.vlgmr.msra.gmra.mxu0 %vm463_vm2, %v454_v4  ;;  %v1253_v6 = vld [vmem:[%s1535_s4] ss:$0 sm:$0xff] }
  0x11   : > { %1306 = vmatprep.mubr.msk.f32.mxu1 %vm1358_vm1, %v1357_v1  ;;  %1301 = vmatprep.mubr.msk.f32.mxu0 %vm1358_vm1, %v1357_v1  ;;  %v627_v13 = vld [vmem:[%s1538_s7] sm:$0xf] }
  0x12   : > { %1300 = vmatpush3.msk.msra.mxu0 %vm467_vm0, %v627_v13  ;;  %v626_v14 = vld [vmem:[%s445_s26] sm:$0xff] }
  0x13   : > { %1309 = vmatprep.subr.mxu0 %v1357_v1  ;;  %v1259_v30 = vld [vmem:[%s1539_s8] ss:$0 sm:$0xff] }
  0x14   : > { %1302 = vmatmul.mubr.msk.f32.vlgmr.msra.gmra.mxu0 %vm463_vm2, %v626_v14  ;;  %v1049_v48 = vld [vmem:[%s1540_s9] sm:$0xf] }
  0x15   : > { %1311 = vmatprep.mubr.msk.f32.mxu0 %vm1358_vm1, %v1357_v1  ;;  %v1268_v53 = vld [vmem:[%s1541_s10] ss:$0 sm:$0xff] }
  0xd0   : > { %v622_v7 = vpop.f32.mrf.mxu1  ;;  %v537_v9 = vpop.f32.mrf.mxu0 }
  0xd1   : > { %v623_v8 = vadd.f32 %v1256_v5, %v622_v7  ;;  %v538_v10 = vadd.f32 %v1253_v6, %v537_v9 }
  0xd2   : > { %v1298_v11 = vpop.f32.mrf.mxu1  ;;  %v1293_v12 = vpop.f32.mrf.mxu0 }
  0xd3   : > { %877 = vrot.lane.b32.xlu0 %v623_v8, %s1359_s20  ;;  %1305 = vmatpush3.xpose.msk.msra.mxu1 %vm711_vm3, %v623_v8 }
  0xd4   : > { %1314 = vmatprep.subr.mxu1 %v1357_v1  ;;  %v707_v31 = vpop.f32.mrf.mxu0 }
  0xd5   : > { %v708_v32 = vadd.f32 %v1259_v30, %v707_v31 }
  0xd6   : > { %1307 = vmatmul.mubr.msk.f32.vlgmr.msra.gmra.mxu1 %vm711_vm3, %v538_v10  ;;  %v1303_v33 = vpop.f32.mrf.mxu0 }
  0xd7   : > { %875 = vrot.lane.b32.xlu0 %v538_v10, %s1359_s20  ;;  %1316 = vmatprep.mubr.msk.f32.mxu1 %vm1358_vm1, %v1357_v1 }
  0xd8   : > { %1310 = vmatpush3.msra.mxu0 %v708_v32 }
  0xd9   : > { %1319 = vmatprep.subr.mxu0 %v1357_v1 }
 0x145   : > { %v878_v15 = vpop.permute.xlu0 %877 }
 0x146   : > { %1315 = vmatpush3.xpose.msk.msra.mxu1 %vm711_vm3, %v878_v15 }
 0x147   : > { %1324 = vmatprep.subr.mxu1 %v1357_v1 }
 0x149   : > { %v876_v16 = vpop.permute.xlu0 %875 }
 0x14a   : > { %1317 = vmatmul.mubr.msk.f32.vlgmr.msra.gmra.mxu1 %vm711_vm3, %v876_v16 }
 0x14b   : > { %1326 = vmatprep.mubr.msk.f32.mxu1 %vm1358_vm1, %v1357_v1  ;;  %1325 = vmatpush3.msk.msra.mxu1 %vm467_vm0, %v1049_v48 }
 0x196   : > { %v784_v17 = vpop.f32.mrf.mxu1 }
 0x197   : > { %v788_v18 = vmul.f32 0.70710677, %v784_v17 }
 0x198   : > { %v1308_v19 = vpop.f32.mrf.mxu1 }
 0x199   : > { %v790_v20 = vsel %vm789_vm4, %v788_v18, -inf }
 0x19a   : > { %791 = vmax.xlane.f32.xlu1 %v790_v20 }
 0x20a   : > { %v949_v21 = vpop.f32.mrf.mxu1 }
 0x20b   : > { %v953_v22 = vmul.f32 0.70710677, %v949_v21 }
 0x20c   : > { %v1318_v23 = vpop.f32.mrf.mxu1 }
 0x20d   : > { %v954_v24 = vsel %vm789_vm4, %v953_v22, -inf }
 0x20e   : > { %955 = vmax.xlane.f32.xlu1 %v954_v24 }
 0x223   : > { %v792_v25 = vpop.xlane.xlu1 %791 }
 0x224   : > { %v793_v26 = vsub.f32 %v788_v18, %v792_v25 }
 0x226   : > { %v794_v27 = vmul.f32 1.442695, %v793_v26 }
 0x228   : > { %1341 = vpow2.f32 %v794_v27 }
 0x235   : > { %v1342_v28 = vpop.eup %1341 }
 0x236   : > { %v796_v29 = vsel %vm789_vm4, %v1342_v28, 0.0 }
 0x237   : > { %797 = vadd.xlane.f32.xlu0 %v796_v29 }
 0x297   : > { %v956_v34 = vpop.xlane.xlu1 %955 }
 0x298   : > { %v957_v35 = vsub.f32 %v953_v22, %v956_v34 }
 0x29a   : > { %v958_v36 = vmul.f32 1.442695, %v957_v35 }
 0x29c   : > { %1343 = vpow2.f32 %v958_v36 }
 0x2a9   : > { %v1344_v37 = vpop.eup %1343 }
 0x2aa   : > { %v960_v38 = vsel %vm789_vm4, %v1344_v37, 0.0 }
 0x2ab   : > { %961 = vadd.xlane.f32.xlu1 %v960_v38 }
 0x2bc   : > { %966 = vrot.lane.b32.xlu1 %v708_v32, %s1359_s20 }
 0x2c0   : > { %v798_v39 = vpop.xlane.xlu0 %797 }
 0x2c1   : > { %1345 = vrcp.f32 %v798_v39 }
 0x2ce   : > { %v1346_v40 = vpop.eup %1345 }
 0x2cf   : > { %v800_v41 = vmul.f32 %v1346_v40, %v1342_v28 }
 0x2d1   : > { %1312 = vmatmul.mubr.msk.f32.vlgmr.msra.gmra.mxu0 %vm789_vm4, %v800_v41 }
 0x2d2   : > { %1321 = vmatprep.mubr.msk.f32.mxu0 %vm1358_vm1, %v1357_v1 }
 0x334   : > { %v962_v42 = vpop.xlane.xlu1 %961 }
 0x335   : > { %1347 = vrcp.f32 %v962_v42 }
 0x338   : > { %v967_v43 = vpop.permute.xlu1 %966 }
 0x339   : > { %1320 = vmatpush3.msra.mxu0 %v967_v43 }
 0x342   : > { %v1348_v44 = vpop.eup %1347 }
 0x343   : > { %v964_v45 = vmul.f32 %v1348_v44, %v1344_v37 }
 0x345   : > { %1322 = vmatmul.mubr.msk.f32.vlgmr.msra.gmra.mxu0 %vm789_vm4, %v964_v45  ;;  %1134 = vst.msk [vmem:[%s453_s14] sm:$0xff] %vm789_vm4, %v964_v45 }
 0x391   : > { %v870_v46 = vpop.f32.mrf.mxu0 }
 0x392   : > { %874 = vst.msk [vmem:[#allocation2] sm:$0xff] %vm711_vm3, %v870_v46 }
 0x393   : > { %v1313_v47 = vpop.f32.mrf.mxu0 }
 0x405   : > { %v1038_v49 = vpop.f32.mrf.mxu0 }
 0x406   : > { %1043 = vrot.lane.b32.xlu1 %v1038_v49, %s1360_s17 }
 0x407   : > { %v1323_v50 = vpop.f32.mrf.mxu0 }
 0x478   : > { %v1044_v51 = vpop.permute.xlu1 %1043 }
 0x479   : > { %1047 = vst.msk [vmem:[#allocation2] sm:$0xff] %vm1046_vm5, %v1044_v51 }
 0x480   : > { %v1048_v52 = vld [vmem:[#allocation2] sm:$0xff] }
 0x481   : > { %1327 = vmatmul.mubr.msk.f32.vlgmr.msra.gmra.mxu1 %vm463_vm2, %v1048_v52 }
 0x541   : > { %v1129_v54 = vpop.f32.mrf.mxu1 }
 0x542   : > { %v1130_v55 = vadd.f32 %v1268_v53, %v1129_v54 }
 0x543   : > { %v1328_v56 = vpop.f32.mrf.mxu1 }
 0x544   : > { %1133 = vst.msk [vmem:[%s449_s23] sm:$0xff] %vm463_vm2, %v1130_v55 }
 0x545 PF: > { %s23_s21 = sadd.s32 1, %s1355_s21  }
 0x546   : > { %p20_p4 = scmp.ge.s32.totalorder %s23_s21, 4  }
 0x548   :  { %22 = sbr.rel (!%p20_p4) target bundleno = 1 (0x1), region = 112 }

</bundles_post_ra>
